<compile_context>
chip_gen: v6e
topology: v6e:2x2x1
jax: 0.10.0
libtpu: 0.0.40
codegen_flags: <defaults>
</compile_context>

<pallas_src>
import functools
import math

import jax
import jax.numpy as jnp
from jax.experimental import pallas as pl
from jax.experimental.pallas import tpu as pltpu


LN_EPS = 1e-5


def adapter_kernel(x_ref, g_ref, beta_ref, w1_ref, b1_ref, w2_ref, b2_ref, o_ref,
                   *, mm_dtype, approx_sigmoid):
    # x_ref : (tm, c) row-tile
    x = x_ref[...].astype(jnp.float32)

    # LayerNorm over last dim (c): single-pass stats, gamma folded into scale.
    mean = jnp.mean(x, axis=-1, keepdims=True)
    mean_sq = jnp.mean(x * x, axis=-1, keepdims=True)
    var = jnp.maximum(mean_sq - mean * mean, 0.0)
    inv = jax.lax.rsqrt(var + LN_EPS)                   # (tm, 1)
    scale = inv * g_ref[...]                            # (tm, c) after bcast
    xn = (x - mean) * scale + beta_ref[...]

    # fc1 (+ bias); MXU operands in mm_dtype, f32 accumulate.
    h = jnp.dot(xn.astype(mm_dtype), w1_ref[...],
                preferred_element_type=jnp.float32) + b1_ref[...]

    # QuickGELU: h * sigmoid(1.702 * h)
    denom = 1.0 + jnp.exp(-1.702 * h)
    if approx_sigmoid:
        h = h * pl.reciprocal(denom, approx=True)       # EUP slot, divide-free
    else:
        h = h / denom                                   # exact f32 path

    # fc2 (+ bias)
    y = jnp.dot(h.astype(mm_dtype), w2_ref[...],
                preferred_element_type=jnp.float32) + b2_ref[...]

    # Residual add in f32, cast once on store.
    o_ref[...] = (x + y).astype(o_ref.dtype)


def _adapter_forward_impl(x, gamma, beta, w1, b1, w2, b2, *, tm=None, mm_dtype=None):
    """x: (b, h, w, c) -> (b, h, w, c)."""
    b, h, w, c = x.shape
    hidden = w1.shape[1]
    M = b * h * w

    in_dtype = jnp.dtype(x.dtype)
    if mm_dtype is None:
        mm_dtype = jnp.bfloat16 if in_dtype == jnp.dtype(jnp.bfloat16) else jnp.float32
    mm_dtype = jnp.dtype(mm_dtype)
    fast = mm_dtype == jnp.dtype(jnp.bfloat16)

    # Pad the r-reduced hidden dim to a full 128-lane multiple (zero cols/rows,
    # zero bias -> QuickGELU(0)=0 -> fc2 contribution 0: semantics preserved).
    hidden_p = max(128, ((hidden + 127) // 128) * 128)
    if hidden_p != hidden:
        w1 = jnp.pad(w1, ((0, 0), (0, hidden_p - hidden)))
        b1 = jnp.pad(b1, ((0, hidden_p - hidden),))
        w2 = jnp.pad(w2, ((0, hidden_p - hidden), (0, 0)))

    # Weights streamed once in the matmul dtype (halves weight HBM traffic bf16).
    w1 = w1.astype(mm_dtype)
    w2 = w2.astype(mm_dtype)

    # Row-tile: big tiles amortize per-grid-step overhead (~0.35us) and reach
    # the HBM roofline; shrink only to keep grid >= 2 (megacore).  Respect
    # sublane packing: multiple of 8 (f32) / 16 (bf16).
    sub = 16 if in_dtype == jnp.dtype(jnp.bfloat16) else 8
    if tm is None:
        tm = 1024 if in_dtype == jnp.dtype(jnp.bfloat16) else 512
        while tm > sub and pl.cdiv(M, tm) < 2:
            tm //= 2
        tm = max(tm, sub)
    assert tm % sub == 0, "row tile must respect sublane packing"

    # Pad rows so any (b, h, w) works; padded rows are computed and discarded.
    n_tiles = pl.cdiv(M, tm)
    M_pad = n_tiles * tm

    x2 = x.reshape(M, c)
    if M_pad != M:
        x2 = jnp.pad(x2, ((0, M_pad - M), (0, 0)))
    g2 = gamma.reshape(1, c).astype(jnp.float32)
    be2 = beta.reshape(1, c).astype(jnp.float32)
    b1_2 = b1.reshape(1, hidden_p).astype(jnp.float32)
    b2_2 = b2.reshape(1, c).astype(jnp.float32)

    # Explicit scoped-VMEM budget: double-buffered x/out tiles + resident
    # weights + f32 temporaries, with headroom, capped below v7x physical VMEM.
    io_bytes = 2 * tm * c * (in_dtype.itemsize + in_dtype.itemsize)
    wt_bytes = 2 * 2 * c * hidden_p * mm_dtype.itemsize
    tmp_bytes = 8 * tm * max(c, hidden_p) * 4
    vmem_limit = int(min(max(io_bytes + wt_bytes + tmp_bytes + (4 << 20),
                             16 << 20), 48 << 20))

    kernel = functools.partial(adapter_kernel, mm_dtype=mm_dtype,
                               approx_sigmoid=fast)

    out2 = pl.pallas_call(
        kernel,
        out_shape=jax.ShapeDtypeStruct((M_pad, c), x.dtype),
        grid_spec=pltpu.PrefetchScalarGridSpec(
            num_scalar_prefetch=0,
            grid=(n_tiles,),
            in_specs=[
                pl.BlockSpec((tm, c), lambda i: (i, 0)),         # x rows
                pl.BlockSpec((1, c), lambda i: (0, 0)),          # ln gamma
                pl.BlockSpec((1, c), lambda i: (0, 0)),          # ln beta
                pl.BlockSpec((c, hidden_p), lambda i: (0, 0)),   # W1 (padded)
                pl.BlockSpec((1, hidden_p), lambda i: (0, 0)),   # b1 (padded)
                pl.BlockSpec((hidden_p, c), lambda i: (0, 0)),   # W2 (padded)
                pl.BlockSpec((1, c), lambda i: (0, 0)),          # b2
            ],
            out_specs=pl.BlockSpec((tm, c), lambda i: (i, 0)),
        ),
        compiler_params=pltpu.CompilerParams(
            dimension_semantics=("parallel",),
            vmem_limit_bytes=vmem_limit,
        ),
    )(x2, g2, be2, w1, b1_2, w2, b2_2)

    if M_pad != M:
        out2 = out2[:M]
    return out2.reshape(b, h, w, c)


# jit the wrapper so the padding / reshape / weight-cast plumbing fuses and is
# hoisted; tm / mm_dtype are compile-time knobs.
adapter_forward = jax.jit(_adapter_forward_impl, static_argnames=("tm", "mm_dtype"))


def xavier_uniform(key, fan_in, fan_out, dtype=jnp.float32):
    # matches torch.nn.init.xavier_uniform_ on a (fan_out, fan_in) weight
    bound = math.sqrt(6.0 / (fan_in + fan_out))
    return jax.random.uniform(key, (fan_in, fan_out), dtype, -bound, bound)


def init_adapter_params(key, c, r):
    hidden = c // r
    k1, k2, k3, k4 = jax.random.split(key, 4)
    # Linear weights stored transposed (in_features, out_features) for x @ W
    w1 = xavier_uniform(k1, c, hidden)
    b1 = 1e-6 * jax.random.normal(k2, (hidden,), jnp.float32)
    w2 = xavier_uniform(k3, hidden, c)
    b2 = 1e-6 * jax.random.normal(k4, (c,), jnp.float32)
    gamma = jnp.ones((c,), jnp.float32)   # nn.LayerNorm default affine init
    beta = jnp.zeros((c,), jnp.float32)
    return gamma, beta, w1, b1, w2, b2


def adapter_reference(x, gamma, beta, w1, b1, w2, b2):
    b, h, w, c = x.shape
    xv = x.reshape(b, h * w, c).astype(jnp.float32)
    mean = jnp.mean(xv, axis=-1, keepdims=True)
    var = jnp.mean((xv - mean) ** 2, axis=-1, keepdims=True)
    xn = (xv - mean) / jnp.sqrt(var + LN_EPS) * gamma + beta
    hdn = xn @ w1 + b1
    hdn = hdn * jax.nn.sigmoid(1.702 * hdn)
    out = hdn @ w2 + b2
    return x.astype(jnp.float32) + out.reshape(b, h, w, c)


if __name__ == "__main__":
    # Small shapes consistent with the module (original: c=768, r=12).
    B, H, W, C, R = 2, 8, 8, 256, 4   # hidden = 64 (padded to 128), M = 128 rows

    key = jax.random.PRNGKey(0)
    kx, kp = jax.random.split(key)
    x = jax.random.normal(kx, (B, H, W, C), jnp.float32)
    params = init_adapter_params(kp, C, R)

    # --- f32 I/O path: exact divide, f32 matmuls; tight check vs reference ---
    out = jax.block_until_ready(adapter_forward(x, *params))
    ref = adapter_reference(x, *params)
    assert out.shape == (B, H, W, C)
    assert jnp.allclose(out, ref.astype(x.dtype), atol=1e-4, rtol=1e-4), \
        "f32 mismatch vs reference"

    # --- bf16 I/O perf path: bf16 MXU operands + approx-reciprocal QuickGELU ---
    x_bf = x.astype(jnp.bfloat16)
    out_bf = jax.block_until_ready(adapter_forward(x_bf, *params))
    ref_bf = adapter_reference(x_bf.astype(jnp.float32), *params)
    assert out_bf.dtype == jnp.bfloat16 and out_bf.shape == (B, H, W, C)
    assert jnp.allclose(out_bf.astype(jnp.float32), ref_bf, atol=1e-1, rtol=1e-1), \
        "bf16 mismatch vs reference"

    print("KERNEL_OK")
</pallas_src>

<mosaic_0001>
module attributes {stable_mosaic.version = 11 : i64} {
  func.func @adapter_kernel(%arg0: i32, %arg1: memref<64x256xf32, #tpu.memory_space<vmem>>, %arg2: memref<1x256xf32, #tpu.memory_space<vmem>>, %arg3: memref<1x256xf32, #tpu.memory_space<vmem>>, %arg4: memref<256x128xf32, #tpu.memory_space<vmem>>, %arg5: memref<1x128xf32, #tpu.memory_space<vmem>>, %arg6: memref<128x256xf32, #tpu.memory_space<vmem>>, %arg7: memref<1x256xf32, #tpu.memory_space<vmem>>, %arg8: memref<64x256xf32, #tpu.memory_space<vmem>>) attributes {dimension_semantics = [#tpu.dimension_semantics<parallel>], iteration_bounds = array<i64: 2>, scalar_prefetch = 0 : i64, scratch_operands = 0 : i64, tpu.core_type = #tpu.core_type<tc>, window_params = [{transform_indices = @transform_0, window_bounds = array<i64: 64, 256>}, {pipeline_mode = #tpu.pipeline_mode<synchronous>, transform_indices = @transform_1, window_bounds = array<i64: 1, 256>}, {pipeline_mode = #tpu.pipeline_mode<synchronous>, transform_indices = @transform_2, window_bounds = array<i64: 1, 256>}, {pipeline_mode = #tpu.pipeline_mode<synchronous>, transform_indices = @transform_3, window_bounds = array<i64: 256, 128>}, {pipeline_mode = #tpu.pipeline_mode<synchronous>, transform_indices = @transform_4, window_bounds = array<i64: 1, 128>}, {pipeline_mode = #tpu.pipeline_mode<synchronous>, transform_indices = @transform_5, window_bounds = array<i64: 128, 256>}, {pipeline_mode = #tpu.pipeline_mode<synchronous>, transform_indices = @transform_6, window_bounds = array<i64: 1, 256>}, {transform_indices = @transform_7, window_bounds = array<i64: 64, 256>}]} {
    %c0 = arith.constant 0 : index
    %c0_0 = arith.constant 0 : index
    %0 = vector.load %arg1[%c0, %c0_0] : memref<64x256xf32, #tpu.memory_space<vmem>>, vector<64x256xf32>
    %cst = arith.constant dense<0.000000e+00> : vector<64xf32>
    %1 = vector.multi_reduction <add>, %0, %cst [1] : vector<64x256xf32> to vector<64xf32>
    %2 = vector.shape_cast %1 : vector<64xf32> to vector<64x1xf32>
    %cst_1 = arith.constant 2.560000e+02 : f32
    %3 = vector.broadcast %cst_1 : f32 to vector<64x1xf32>
    %4 = arith.divf %2, %3 : vector<64x1xf32>
    %5 = arith.mulf %0, %0 : vector<64x256xf32>
    %cst_2 = arith.constant dense<0.000000e+00> : vector<64xf32>
    %6 = vector.multi_reduction <add>, %5, %cst_2 [1] : vector<64x256xf32> to vector<64xf32>
    %7 = vector.shape_cast %6 : vector<64xf32> to vector<64x1xf32>
    %cst_3 = arith.constant 2.560000e+02 : f32
    %8 = vector.broadcast %cst_3 : f32 to vector<64x1xf32>
    %9 = arith.divf %7, %8 : vector<64x1xf32>
    %10 = arith.mulf %4, %4 : vector<64x1xf32>
    %11 = arith.subf %9, %10 : vector<64x1xf32>
    %cst_4 = arith.constant 0.000000e+00 : f32
    %12 = vector.broadcast %cst_4 : f32 to vector<64x1xf32>
    %13 = arith.maximumf %11, %12 : vector<64x1xf32>
    %cst_5 = arith.constant 9.99999974E-6 : f32
    %14 = vector.broadcast %cst_5 : f32 to vector<64x1xf32>
    %15 = arith.addf %13, %14 : vector<64x1xf32>
    %16 = math.rsqrt %15 : vector<64x1xf32>
    %c0_6 = arith.constant 0 : index
    %c0_7 = arith.constant 0 : index
    %17 = vector.load %arg2[%c0_6, %c0_7] : memref<1x256xf32, #tpu.memory_space<vmem>>, vector<1x256xf32>
    %18 = vector.broadcast %16 : vector<64x1xf32> to vector<64x256xf32>
    %19 = vector.broadcast %17 : vector<1x256xf32> to vector<64x256xf32>
    %20 = arith.mulf %18, %19 : vector<64x256xf32>
    %21 = vector.broadcast %4 : vector<64x1xf32> to vector<64x256xf32>
    %22 = arith.subf %0, %21 : vector<64x256xf32>
    %23 = arith.mulf %22, %20 : vector<64x256xf32>
    %c0_8 = arith.constant 0 : index
    %c0_9 = arith.constant 0 : index
    %24 = vector.load %arg3[%c0_8, %c0_9] : memref<1x256xf32, #tpu.memory_space<vmem>>, vector<1x256xf32>
    %25 = vector.broadcast %24 : vector<1x256xf32> to vector<64x256xf32>
    %26 = arith.addf %23, %25 : vector<64x256xf32>
    %c0_10 = arith.constant 0 : index
    %c0_11 = arith.constant 0 : index
    %27 = vector.load %arg4[%c0_10, %c0_11] : memref<256x128xf32, #tpu.memory_space<vmem>>, vector<256x128xf32>
    %cst_12 = arith.constant dense<0.000000e+00> : vector<64x128xf32>
    %28 = tpu.matmul %26, %27, %cst_12 {dimension_numbers = #tpu.dot_dimension_numbers<[1], [0], [0], [1], [0, 0, 1, 1], [], []>} : vector<64x256xf32>, vector<256x128xf32>, vector<64x128xf32> -> vector<64x128xf32>
    %c0_13 = arith.constant 0 : index
    %c0_14 = arith.constant 0 : index
    %29 = vector.load %arg5[%c0_13, %c0_14] : memref<1x128xf32, #tpu.memory_space<vmem>>, vector<1x128xf32>
    %30 = vector.broadcast %29 : vector<1x128xf32> to vector<64x128xf32>
    %31 = arith.addf %28, %30 : vector<64x128xf32>
    %cst_15 = arith.constant -1.702000e+00 : f32
    %32 = vector.broadcast %cst_15 : f32 to vector<64x128xf32>
    %33 = arith.mulf %32, %31 : vector<64x128xf32>
    %34 = math.exp %33 : vector<64x128xf32>
    %cst_16 = arith.constant 1.000000e+00 : f32
    %35 = vector.broadcast %cst_16 : f32 to vector<64x128xf32>
    %36 = arith.addf %35, %34 : vector<64x128xf32>
    %37 = arith.divf %31, %36 : vector<64x128xf32>
    %c0_17 = arith.constant 0 : index
    %c0_18 = arith.constant 0 : index
    %38 = vector.load %arg6[%c0_17, %c0_18] : memref<128x256xf32, #tpu.memory_space<vmem>>, vector<128x256xf32>
    %cst_19 = arith.constant dense<0.000000e+00> : vector<64x256xf32>
    %39 = tpu.matmul %37, %38, %cst_19 {dimension_numbers = #tpu.dot_dimension_numbers<[1], [0], [0], [1], [0, 0, 1, 1], [], []>} : vector<64x128xf32>, vector<128x256xf32>, vector<64x256xf32> -> vector<64x256xf32>
    %c0_20 = arith.constant 0 : index
    %c0_21 = arith.constant 0 : index
    %40 = vector.load %arg7[%c0_20, %c0_21] : memref<1x256xf32, #tpu.memory_space<vmem>>, vector<1x256xf32>
    %41 = vector.broadcast %40 : vector<1x256xf32> to vector<64x256xf32>
    %42 = arith.addf %39, %41 : vector<64x256xf32>
    %43 = arith.addf %0, %42 : vector<64x256xf32>
    %c0_22 = arith.constant 0 : index
    %c0_23 = arith.constant 0 : index
    %44 = vector.load %arg8[%c0_22, %c0_23] : memref<64x256xf32, #tpu.memory_space<vmem>>, vector<64x256xf32>
    tpu.vector_store %arg8[%c0_22, %c0_23], %43 {strides = array<i32>} : memref<64x256xf32, #tpu.memory_space<vmem>>, vector<64x256xf32>,
    return
  }
  func.func @transform_0(%arg0: i32) -> (i32, i32) {
    %c0_i32 = arith.constant 0 : i32
    %c0_i32_0 = arith.constant 0 : i32
    return %arg0, %c0_i32 : i32, i32
  }
  func.func @transform_1(%arg0: i32) -> (i32, i32) {
    %c0_i32 = arith.constant 0 : i32
    %c0_i32_0 = arith.constant 0 : i32
    %c0_i32_1 = arith.constant 0 : i32
    return %c0_i32, %c0_i32_0 : i32, i32
  }
  func.func @transform_2(%arg0: i32) -> (i32, i32) {
    %c0_i32 = arith.constant 0 : i32
    %c0_i32_0 = arith.constant 0 : i32
    %c0_i32_1 = arith.constant 0 : i32
    return %c0_i32, %c0_i32_0 : i32, i32
  }
  func.func @transform_3(%arg0: i32) -> (i32, i32) {
    %c0_i32 = arith.constant 0 : i32
    %c0_i32_0 = arith.constant 0 : i32
    %c0_i32_1 = arith.constant 0 : i32
    return %c0_i32, %c0_i32_0 : i32, i32
  }
  func.func @transform_4(%arg0: i32) -> (i32, i32) {
    %c0_i32 = arith.constant 0 : i32
    %c0_i32_0 = arith.constant 0 : i32
    %c0_i32_1 = arith.constant 0 : i32
    return %c0_i32, %c0_i32_0 : i32, i32
  }
  func.func @transform_5(%arg0: i32) -> (i32, i32) {
    %c0_i32 = arith.constant 0 : i32
    %c0_i32_0 = arith.constant 0 : i32
    %c0_i32_1 = arith.constant 0 : i32
    return %c0_i32, %c0_i32_0 : i32, i32
  }
  func.func @transform_6(%arg0: i32) -> (i32, i32) {
    %c0_i32 = arith.constant 0 : i32
    %c0_i32_0 = arith.constant 0 : i32
    %c0_i32_1 = arith.constant 0 : i32
    return %c0_i32, %c0_i32_0 : i32, i32
  }
  func.func @transform_7(%arg0: i32) -> (i32, i32) {
    %c0_i32 = arith.constant 0 : i32
    %c0_i32_0 = arith.constant 0 : i32
    return %arg0, %c0_i32 : i32, i32
  }
}

</mosaic_0001>

<bundles_post_ra>
// kernel: _adapter_forward_impl.1
= control target key start
LH: loop header
LB: loop body
LE: loop exit
PB: predicated region body
PF: predicated region fallthrough
CT: control target
= control target key end

     0   :  { %12 = vsyncpa [#allocation3], 0  ;;  %s1830_s0 = inlined_call_operand.vmem [shape: f32[128,256], index: 0, kind: input, shape index: {}]   ;;  %s1831_s1 = inlined_call_operand.vmem [shape: f32[1,256], index: 1, kind: input, shape index: {}]   ;;  %s1832_s2 = inlined_call_operand.vmem [shape: f32[1,256], index: 2, kind: input, shape index: {}]   ;;  %s1833_s3 = inlined_call_operand.vmem [shape: f32[256,128], index: 3, kind: input, shape index: {}]   ;;  %s1834_s4 = inlined_call_operand.vmem [shape: f32[1,128], index: 4, kind: input, shape index: {}]   ;;  %s1835_s5 = inlined_call_operand.vmem [shape: f32[128,256], index: 5, kind: input, shape index: {}]   ;;  %s1836_s6 = inlined_call_operand.vmem [shape: f32[1,256], index: 6, kind: input, shape index: {}]   ;;  %s1837_s7 = inlined_call_operand.hbm [shape: f32[128,256], index: 7, kind: output, shape index: {}]  }
   0x1   :  { %14 = vsyncpa [#allocation3 + $0x1], 0  ;;  %s1236_s24 = smov 0   ;;  %s1238_s25 = smov 0  }
   0x2   :  { %s1240_s26 = smov 0   ;;  %s1242_s27 = smov 0  }
   0x3 LB: > { %s1257_s28 = sadd.s32 4294967295, %s1190_s27   ;;  %s966_s29 = sadd.s32 4294967294, %s1190_s27   ;;  %s1190_s27 = sphi %s1242_s27, %s1843_s27   ;;  %s1186_s26 = sphi %s1240_s26, %s1842_s26   ;;  %s1182_s25 = sphi %s1238_s25, %s1841_s25   ;;  %s1178_s24 = sphi %s1236_s24, %s1840_s24  }
   0x4   : > { %s1261_s30 = sadd.s32 1, %s1190_s27   ;;  %s179_s8 = sadd.s32 1, %s1186_s26 }
   0x5   : > { %s176_s9 = ssub.s32 %s1190_s27, %s1261_s30  ;;  %p189_p0 = scmp.ne.s32.totalorder %s1186_s26, %s1182_s25 }
   0x6   : > { %p177_p1 = scmp.eq.s32.totalorder %s176_s9, 0  ;;  %p190_p2 = scmp.eq.s32.totalorder %s1257_s28, 1 }
   0x7   : > { %p195_p3 = scmp.ne.s32.totalorder %s1182_s25, %s1178_s24  ;;  %p196_p4 = scmp.eq.s32.totalorder %s966_s29, 1 }
   0x8   : > { %s1272_s10 = scalar_select %p177_p1, %s1186_s26, %s179_s8  }
   0x9   : > { %p1274_p5 = por %p190_p2, %p189_p0  ;;  %p1278_p6 = por %p196_p4, %p195_p3 }
   0xa   : > { %p969_p7 = scmp.ge.s32.totalorder %s1190_s27, 1  ;;  %p242_p8 = scmp.lt.s32.totalorder %s1190_s27, 3 }
   0xc   : > { %p243_p9 = pnand %p969_p7, %p242_p8 }
   0xd   : > { %s971_s13 = sshll.u32 (!%p243_p9), %s1257_s28, 3  ;;  %s983_s18 = sshll.u32 (!%p243_p9), %s1257_s28, 11 }
   0xe   : > { %246 = sbr.rel (%p243_p9) target bundleno = 674 (0x2a2), region = 48  ;;  %p276_p10 = scmp.lt.s32.totalorder (!%p243_p9), %s971_s13, 15 }
   0xf   : > { %s1781_s22 = scalar_lea.hbm (!%p243_p9), %s1837_s7, %s983_s18  ;;  %s1193_s23 = smov (!%p243_p9), [#allocation2]  }
  0x10   : > { %s1134_s29 = sshll.u32 (!%p243_p9), %s1193_s23, 4  ;;  %s1135_s29 = int_to_ptr.vmem [resolvable:$false] %s1134_s29 }
  0x11   : > { %s1136_s8 = scalar_lea.vmem (!%p243_p9), %s1135_s29, 4096 }
  0x13   : > { %s1845_s13 = smov (!%p276_p10, %s971_s13), 15  ;;  %v539_v30 = vld [vmem:[%s1833_s3 + $0xf8] sm:$0xff]  ;;  %v538_v38 = vld [vmem:[%s1833_s3 + $0xf0] sm:$0xff]  ;;  %v537_v40 = vld [vmem:[%s1833_s3 + $0xe8] sm:$0xff] }
  0x14   : > { %s981_s14 = sshll.u32 %s1845_s13, 4  ;;  %984 = vmatprep.subr.mxu0 %v539_v30  ;;  %v523_v34 = vld [vmem:[%s1833_s3 + $0x78] sm:$0xff]  ;;  %v522_v39 = vld [vmem:[%s1833_s3 + $0x70] sm:$0xff]  ;;  %v521_v44 = vld [vmem:[%s1833_s3 + $0x68] sm:$0xff] }
  0x15   : > { %s1288_s17 = scalar_lea.vmem %s1830_s0, %s981_s14  ;;  %985 = vmatpush3.msra.mxu0 %v523_v34  ;;  %v536_v48 = vld [vmem:[%s1833_s3 + $0xe0] sm:$0xff]  ;;  %v535_v50 = vld [vmem:[%s1833_s3 + $0xd8] sm:$0xff]  ;;  %v534_v56 = vld [vmem:[%s1833_s3 + $0xd0] sm:$0xff]  ;;  %s272_s14 = sand.u32 1, %s1182_s25  }
  0x16   : > { %v1291_v0 = vld [vmem:[%s1288_s17 + $0x10] sm:$0xff]  ;;  %v1294_v1 = vld [vmem:[%s1288_s17 + $0x18] sm:$0xff]  ;;  %v1297_v2 = vld [vmem:[%s1288_s17] sm:$0xff]  ;;  %986 = vmatprep.subr.mxu0 %v538_v38  ;;  %s970_s15 = sshll.u32 %s272_s14, 7  ;;  %s1790_s28 = scalar_lea.sflag [#allocation3], %s272_s14 }
  0x17   : > { %v302_v3 = vadd.f32 %v1294_v1, %v1291_v0  ;;  %v1302_v4 = vld [vmem:[%s1288_s17 + $0x8] sm:$0xff]  ;;  %v334_v5 = vmul.f32 %v1291_v0, %v1291_v0  ;;  %v335_v6 = vmul.f32 %v1294_v1, %v1294_v1  ;;  %v332_v7 = vmul.f32 %v1297_v2, %v1297_v2  ;;  %v1311_v8 = vld [vmem:[%s1288_s17 + $0x20] sm:$0xff]  ;;  %v1325_v16 = vld [vmem:[%s1288_s17 + $0x30] sm:$0xff]  ;;  %987 = vmatpush3.msra.mxu0 %v522_v39  ;;  %s1739_s16 = scalar_lea.vmem [#allocation2], %s970_s15 }
  0x18   : > { %v1314_v9 = vld [vmem:[%s1288_s17 + $0x28] sm:$0xff]  ;;  %v299_v10 = vadd.f32 %v1302_v4, %v1297_v2  ;;  %v333_v11 = vmul.f32 %v1302_v4, %v1302_v4  ;;  %v336_v13 = vmul.f32 %v1311_v8, %v1311_v8  ;;  %v1328_v17 = vld [vmem:[%s1288_s17 + $0x38] sm:$0xff]  ;;  %v338_v19 = vmul.f32 %v1325_v16, %v1325_v16  ;;  %v1337_v22 = vld [vmem:[%s1288_s17 + $0x40] sm:$0xff]  ;;  %988 = vmatprep.subr.mxu0 %v537_v40  ;;  %s904_s19 = sshll.u32 %s1739_s16, 4  ;;  %s1783_s19 = int_to_ptr.vmem [resolvable:$true] %s904_s19 }
  0x19   : > { %303 = vadd.xlane.f32.xlu1 %v302_v3  ;;  %v351_v12 = vadd.f32 %v335_v6, %v334_v5  ;;  %v337_v14 = vmul.f32 %v1314_v9, %v1314_v9  ;;  %v339_v20 = vmul.f32 %v1328_v17, %v1328_v17  ;;  %v305_v21 = vadd.f32 %v1314_v9, %v1311_v8  ;;  %v1340_v23 = vld [vmem:[%s1288_s17 + $0x48] sm:$0xff]  ;;  %v1349_v28 = vld [vmem:[%s1288_s17 + $0x50] sm:$0xff]  ;;  %v1352_v29 = vld [vmem:[%s1288_s17 + $0x58] sm:$0xff]  ;;  %p1137_p0 = scmp.lt.s32.totalorder %s1783_s19, %s1135_s29 }
  0x1a   : > { %300 = vadd.xlane.f32.xlu0 %v299_v10  ;;  %v348_v15 = vadd.f32 %v333_v11, %v332_v7  ;;  %v340_v25 = vmul.f32 %v1337_v22, %v1337_v22  ;;  %v341_v26 = vmul.f32 %v1340_v23, %v1340_v23  ;;  %v308_v27 = vadd.f32 %v1328_v17, %v1325_v16  ;;  %v1367_v36 = vld [vmem:[%s1288_s17 + $0x60] sm:$0xff]  ;;  %v1370_v37 = vld [vmem:[%s1288_s17 + $0x68] sm:$0xff]  ;;  %v1391_v46 = vld [vmem:[%s1288_s17 + $0x70] sm:$0xff] }
  0x1b   : > { %v354_v18 = vadd.f32 %v337_v14, %v336_v13  ;;  %v357_v24 = vadd.f32 %v339_v20, %v338_v19  ;;  %v342_v32 = vmul.f32 %v1349_v28, %v1349_v28  ;;  %v343_v33 = vmul.f32 %v1352_v29, %v1352_v29  ;;  %v1394_v47 = vld [vmem:[%s1288_s17 + $0x78] sm:$0xff]  ;;  %989 = vmatpush3.msra.mxu0 %v521_v44  ;;  %v520_v49 = vld [vmem:[%s1833_s3 + $0x60] sm:$0xff]  ;;  %v518_v57 = vld [vmem:[%s1833_s3 + $0x50] sm:$0xff]  ;;  %s1130_s17 = scalar_lea.vmem %s1783_s19, 2048 }
  0x1c   : > { %v360_v31 = vadd.f32 %v341_v26, %v340_v25  ;;  %v311_v35 = vadd.f32 %v1340_v23, %v1337_v22  ;;  %v344_v42 = vmul.f32 %v1367_v36, %v1367_v36  ;;  %v345_v43 = vmul.f32 %v1370_v37, %v1370_v37  ;;  %990 = vmatprep.subr.mxu0 %v536_v48  ;;  %v519_v54 = vld [vmem:[%s1833_s3 + $0x58] sm:$0xff]  ;;  %v533_v58 = vld [vmem:[%s1833_s3 + $0xc8] sm:$0xff]  ;;  %v532_v62 = vld [vmem:[%s1833_s3 + $0xc0] sm:$0xff]  ;;  %p1131_p11 = scmp.ne.s32.totalorder %s1783_s19, %s1130_s17  ;;  %p1138_p1 = scmp.lt.s32.totalorder %s1136_s8, %s1130_s17 }
  0x1d   : > { %352 = vadd.xlane.f32.xlu1 %v351_v12  ;;  %v363_v41 = vadd.f32 %v343_v33, %v342_v32  ;;  %v314_v45 = vadd.f32 %v1352_v29, %v1349_v28  ;;  %991 = vmatpush3.msra.mxu0 %v520_v49  ;;  %v346_v52 = vmul.f32 %v1391_v46, %v1391_v46  ;;  %v517_v60 = vld [vmem:[%s1833_s3 + $0x48] sm:$0xff]  ;;  %v516_v63 = vld [vmem:[%s1833_s3 + $0x40] sm:$0xff]  ;;  %v531_v3 = vld [vmem:[%s1833_s3 + $0xb8] sm:$0xff] }
  0x1e   : > { %349 = vadd.xlane.f32.xlu0 %v348_v15  ;;  %v366_v51 = vadd.f32 %v345_v43, %v344_v42  ;;  %v347_v53 = vmul.f32 %v1394_v47, %v1394_v47  ;;  %992 = vmatprep.subr.mxu0 %v535_v50  ;;  %v317_v55 = vadd.f32 %v1370_v37, %v1367_v36  ;;  %v515_v5 = vld [vmem:[%s1833_s3 + $0x38] sm:$0xff]  ;;  %v530_v6 = vld [vmem:[%s1833_s3 + $0xb0] sm:$0xff]  ;;  %v529_v10 = vld [vmem:[%s1833_s3 + $0xa8] sm:$0xff]  ;;  %p1132_p12 = pnand %p1131_p11, %p1274_p5  ;;  %p1139_p2 = por %p1138_p1, %p1137_p0 }
  0x1f   : > { %993 = vmatpush3.msra.mxu0 %v519_v54  ;;  %v320_v61 = vadd.f32 %v1394_v47, %v1391_v46  ;;  %v514_v7 = vld [vmem:[%s1833_s3 + $0x30] sm:$0xff]  ;;  %v513_v11 = vld [vmem:[%s1833_s3 + $0x28] sm:$0xff]  ;;  %v528_v12 = vld [vmem:[%s1833_s3 + $0xa0] sm:$0xff] }
  0x20   : > { %994 = vmatprep.subr.mxu0 %v534_v56  ;;  %v369_v59 = vadd.f32 %v347_v53, %v346_v52  ;;  %v512_v13 = vld [vmem:[%s1833_s3 + $0x20] sm:$0xff]  ;;  %v527_v14 = vld [vmem:[%s1833_s3 + $0x98] sm:$0xff]  ;;  %v510_v19 = vld [vmem:[%s1833_s3 + $0x10] sm:$0xff]  ;;  %p1133_p13 = pneg %p1132_p12 }
  0x21   : > { %355 = vadd.xlane.f32.xlu1 %v354_v18  ;;  %995 = vmatpush3.msra.mxu0 %v518_v57  ;;  %v511_v15 = vld [vmem:[%s1833_s3 + $0x18] sm:$0xff]  ;;  %v526_v18 = vld [vmem:[%s1833_s3 + $0x90] sm:$0xff]  ;;  %v525_v20 = vld [vmem:[%s1833_s3 + $0x88] sm:$0xff] }
  0x22   : > { %306 = vadd.xlane.f32.xlu0 %v305_v21  ;;  %996 = vmatprep.subr.mxu0 %v533_v58  ;;  %v509_v21 = vld [vmem:[%s1833_s3 + $0x8] sm:$0xff]  ;;  %v508_v25 = vld [vmem:[%s1833_s3] sm:$0xff]  ;;  %p1140_p3 = pnand %p1139_p2, %p1133_p13 }
  0x23   : > { %997 = vmatpush3.msra.mxu0 %v517_v60 }
  0x24   : > { %998 = vmatprep.subr.mxu0 %v532_v62 }
  0x25   : > { %358 = vadd.xlane.f32.xlu1 %v357_v24  ;;  %999 = vmatpush3.msra.mxu0 %v516_v63  ;;  %v524_v24 = vld [vmem:[%s1833_s3 + $0x80] sm:$0xff] }
  0x26   : > { %309 = vadd.xlane.f32.xlu0 %v308_v27  ;;  %1000 = vmatprep.subr.mxu0 %v531_v3 }
  0x27   : > { %1001 = vmatpush3.msra.mxu0 %v515_v5 }
  0x28   : > { %1002 = vmatprep.subr.mxu0 %v530_v6 }
  0x29   : > { %361 = vadd.xlane.f32.xlu1 %v360_v31  ;;  %1003 = vmatpush3.msra.mxu0 %v514_v7 }
  0x2a   : > { %312 = vadd.xlane.f32.xlu0 %v311_v35  ;;  %1004 = vmatprep.subr.mxu0 %v529_v10 }
  0x2b   : > { %1005 = vmatpush3.msra.mxu0 %v513_v11 }
  0x2c   : > { %1006 = vmatprep.subr.mxu0 %v528_v12 }
  0x2d   : > { %364 = vadd.xlane.f32.xlu1 %v363_v41  ;;  %1007 = vmatpush3.msra.mxu0 %v512_v13  ;;  %v420_v13 = vld [vmem:[%s1831_s1] sm:$0x3] }
  0x2e   : > { %315 = vadd.xlane.f32.xlu0 %v314_v45  ;;  %1008 = vmatprep.subr.mxu0 %v527_v14 }
  0x2f   : > { %1009 = vmatpush3.msra.mxu0 %v511_v15 }
  0x30   : > { %1010 = vmatprep.subr.mxu0 %v526_v18 }
  0x31   : > { %367 = vadd.xlane.f32.xlu1 %v366_v51  ;;  %1011 = vmatpush3.msra.mxu0 %v510_v19  ;;  %v422_v51 = vlaneseq }
  0x32   : > { %318 = vadd.xlane.f32.xlu0 %v317_v55  ;;  %1012 = vmatprep.subr.mxu0 %v525_v20 }
  0x33   : > { %1013 = vmatpush3.msra.mxu0 %v509_v21 }
  0x34   : > { %1014 = vmatprep.subr.mxu0 %v524_v24 }
  0x35   : > { %370 = vadd.xlane.f32.xlu1 %v369_v59  ;;  %1015 = vmatpush3.msra.mxu0 %v508_v25  ;;  %v423_v59 = vshrl.u32 %v422_v51, 7 }
  0x36   : > { %321 = vadd.xlane.f32.xlu0 %v320_v61 }
  0x37   : > { %v1500_v10 = vsub.s32 1, %v423_v59  ;;  %v1507_v18 = vsub.s32 0, %v423_v59 }
  0x39   : > { %v1512_v25 = vrot.slane %v420_v13, %v1500_v10 }
  0xa2   : > { %v304_v26 = vpop.xlane.xlu1 %303 }
  0xa3   : > { %v1482_v27 = vmul.f32 0.00390625, %v304_v26  ;;  %v301_v30 = vpop.xlane.xlu0 %300  ;;  %v480_v26 = vld [vmem:[%s1832_s2] sm:$0x3] }
  0xa4   : > { %v1484_v31 = vmul.f32 0.00390625, %v301_v30 }
  0xa5   : > { %v381_v32 = vmul.f32 %v1482_v27, %v1482_v27 }
  0xa6   : > { %v353_v33 = vpop.xlane.xlu1 %352  ;;  %v380_v38 = vmul.f32 %v1484_v31, %v1484_v31  ;;  %v448_v51 = vsub.f32 %v1297_v2, %v1484_v31 }
  0xa7   : > { %v373_v34 = vmul.f32 0.00390625, %v353_v33  ;;  %v350_v35 = vpop.xlane.xlu0 %349 }
  0xa8   : > { %v372_v39 = vmul.f32 0.00390625, %v350_v35  ;;  %v1520_v35 = vrot.slane %v420_v13, %v1507_v18 }
  0xa9   : > { %v389_v40 = vsub.f32 %v373_v34, %v381_v32 }
  0xaa   : > { %v388_v41 = vsub.f32 %v372_v39, %v380_v38  ;;  %v356_v42 = vpop.xlane.xlu1 %355 }
  0xab   : > { %v397_v43 = vmax.f32 %v389_v40, 0.0  ;;  %v307_v44 = vpop.xlane.xlu0 %306  ;;  %v374_v49 = vmul.f32 0.00390625, %v356_v42  ;;  %v1525_v42 = vrot.slane %v480_v26, %v1507_v18 }
  0xac   : > { %v396_v45 = vmax.f32 %v388_v41, 0.0  ;;  %v1490_v48 = vmul.f32 0.00390625, %v307_v44  ;;  %v451_v44 = vsub.f32 %v1294_v1, %v1482_v27 }
  0xad   : > { %v405_v50 = vadd.f32 1e-05, %v397_v43 }
  0xae   : > { %v404_v52 = vadd.f32 1e-05, %v396_v45  ;;  %v382_v53 = vmul.f32 %v1490_v48, %v1490_v48  ;;  %v359_v54 = vpop.xlane.xlu1 %358 }
  0xaf   : > { %1082 = vrsqrt.f32 %v405_v50  ;;  %v310_v55 = vpop.xlane.xlu0 %309  ;;  %v375_v58 = vmul.f32 0.00390625, %v359_v54 }
  0xb0   : > { %1084 = vrsqrt.f32 %v404_v52  ;;  %v390_v56 = vsub.f32 %v374_v49, %v382_v53  ;;  %v1494_v57 = vmul.f32 0.00390625, %v310_v55  ;;  %v1530_v49 = vrot.slane %v480_v26, %v1500_v10 }
  0xb1   : > { %v449_v55 = vsub.f32 %v1302_v4, %v1484_v31 }
  0xb2   : > { %v398_v60 = vmax.f32 %v390_v56, 0.0  ;;  %v383_v61 = vmul.f32 %v1494_v57, %v1494_v57  ;;  %v362_v62 = vpop.xlane.xlu1 %361 }
  0xb3   : > { %v313_v63 = vpop.xlane.xlu0 %312  ;;  %v376_v7 = vmul.f32 0.00390625, %v362_v62 }
  0xb4   : > { %v406_v3 = vadd.f32 1e-05, %v398_v60  ;;  %v391_v5 = vsub.f32 %v375_v58, %v383_v61  ;;  %v1498_v6 = vmul.f32 0.00390625, %v313_v63  ;;  %v450_v61 = vsub.f32 %v1291_v0, %v1482_v27 }
  0xb5   : > { %v453_v27 = vsub.f32 %v1314_v9, %v1490_v48 }
  0xb6   : > { %1086 = vrsqrt.f32 %v406_v3  ;;  %v399_v11 = vmax.f32 %v391_v5, 0.0  ;;  %v365_v12 = vpop.xlane.xlu1 %364  ;;  %v384_v14 = vmul.f32 %v1498_v6, %v1498_v6 }
  0xb7   : > { %v316_v15 = vpop.xlane.xlu0 %315  ;;  %v377_v21 = vmul.f32 0.00390625, %v365_v12 }
  0xb8   : > { %v407_v19 = vadd.f32 1e-05, %v399_v11  ;;  %v1509_v20 = vmul.f32 0.00390625, %v316_v15  ;;  %v392_v24 = vsub.f32 %v376_v7, %v384_v14 }
  0xba   : > { %1088 = vrsqrt.f32 %v407_v19  ;;  %v385_v30 = vmul.f32 %v1509_v20, %v1509_v20  ;;  %v368_v32 = vpop.xlane.xlu1 %367  ;;  %v400_v33 = vmax.f32 %v392_v24, 0.0 }
  0xbb   : > { %v319_v34 = vpop.xlane.xlu0 %318  ;;  %v378_v41 = vmul.f32 0.00390625, %v368_v32 }
  0xbc   : > { %v1083_v38 = vpop.eup %1082  ;;  %v393_v39 = vsub.f32 %v377_v21, %v385_v30  ;;  %v1522_v40 = vmul.f32 0.00390625, %v319_v34  ;;  %v408_v45 = vadd.f32 1e-05, %v400_v33  ;;  %v452_v34 = vsub.f32 %v1311_v8, %v1490_v48 }
  0xbd   : > { %v1085_v43 = vpop.eup %1084  ;;  %v435_v50 = vmul.f32 %v1083_v38, %v1512_v25  ;;  %v434_v60 = vmul.f32 %v1083_v38, %v1520_v35  ;;  %v454_v48 = vsub.f32 %v1325_v16, %v1494_v57 }
  0xbe   : > { %v401_v52 = vmax.f32 %v393_v39, 0.0  ;;  %v386_v53 = vmul.f32 %v1522_v40, %v1522_v40  ;;  %v371_v54 = vpop.xlane.xlu1 %370  ;;  %1090 = vrsqrt.f32 %v408_v45  ;;  %v433_v58 = vmul.f32 %v1085_v43, %v1512_v25 }
  0xbf   : > { %v322_v56 = vpop.xlane.xlu0 %321  ;;  %v432_v59 = vmul.f32 %v1085_v43, %v1520_v35  ;;  %v379_v5 = vmul.f32 0.00390625, %v371_v54  ;;  %v467_v12 = vmul.f32 %v451_v44, %v435_v50  ;;  %v466_v21 = vmul.f32 %v450_v61, %v434_v60 }
  0xc0   : > { %v409_v62 = vadd.f32 1e-05, %v401_v52  ;;  %v394_v63 = vsub.f32 %v378_v41, %v386_v53  ;;  %v1544_v3 = vmul.f32 0.00390625, %v322_v56  ;;  %v465_v7 = vmul.f32 %v449_v55, %v433_v58 }
  0xc1   : > { %v464_v11 = vmul.f32 %v448_v51, %v432_v59  ;;  %v495_v33 = vadd.f32 %v1530_v49, %v467_v12  ;;  %v455_v41 = vsub.f32 %v1328_v17, %v1494_v57  ;;  %v494_v44 = vadd.f32 %v1525_v42, %v466_v21 }
  0xc2   : > { %1092 = vrsqrt.f32 %v409_v62  ;;  %v402_v31 = vmax.f32 %v394_v63, 0.0  ;;  %v387_v14 = vmul.f32 %v1544_v3, %v1544_v3  ;;  %v493_v15 = vadd.f32 %v1530_v49, %v465_v7 }
  0xc3   : > { %v1087_v13 = vpop.eup %1086  ;;  %v492_v19 = vadd.f32 %v1525_v42, %v464_v11  ;;  %v456_v60 = vsub.f32 %v1337_v22, %v1498_v6  ;;  %v457_v61 = vsub.f32 %v1340_v23, %v1498_v6  ;;  %v459_v11 = vsub.f32 %v1352_v29, %v1509_v20 }
  0xc4   : > { %v410_v24 = vadd.f32 1e-05, %v402_v31  ;;  %v437_v26 = vmul.f32 %v1087_v13, %v1512_v25  ;;  %v436_v30 = vmul.f32 %v1087_v13, %v1520_v35  ;;  %v395_v32 = vsub.f32 %v379_v5, %v387_v14  ;;  %611 = vmatprep.mubr.f32.mxu0 %v493_v15 }
  0xc5   : > { %612 = vmatmul.mubr.f32.vlgmr.msra.gmra.mxu0 %v492_v19  ;;  %v458_v14 = vsub.f32 %v1349_v28, %v1509_v20  ;;  %v461_v21 = vsub.f32 %v1370_v37, %v1522_v40 }
  0xc6   : > { %1094 = vrsqrt.f32 %v410_v24  ;;  %v469_v38 = vmul.f32 %v453_v27, %v437_v26  ;;  %v403_v43 = vmax.f32 %v395_v32, 0.0  ;;  %616 = vmatprep.mubr.f32.mxu0 %v495_v33  ;;  %v468_v50 = vmul.f32 %v452_v34, %v436_v30 }
  0xc7   : > { %v1089_v39 = vpop.eup %1088  ;;  %v460_v33 = vsub.f32 %v1367_v36, %v1522_v40 }
  0xc8   : > { %v497_v45 = vadd.f32 %v1530_v49, %v469_v38  ;;  %v439_v51 = vmul.f32 %v1089_v39, %v1512_v25  ;;  %v438_v52 = vmul.f32 %v1089_v39, %v1520_v35  ;;  %v411_v53 = vadd.f32 1e-05, %v403_v43 }
  0xc9   : > { %617 = vmatmul.mubr.f32.gmra.mxu0 %v494_v44  ;;  %v496_v56 = vadd.f32 %v1525_v42, %v468_v50  ;;  %v463_v43 = vsub.f32 %v1394_v47, %v1544_v3  ;;  %v462_v50 = vsub.f32 %v1391_v46, %v1544_v3  ;;  %v729_v3 = vld [vmem:[%s1835_s5 + $0xe8] sm:$0xff] }
  0xca   : > { %v471_v54 = vmul.f32 %v455_v41, %v439_v51  ;;  %1096 = vrsqrt.f32 %v411_v53  ;;  %621 = vmatprep.mubr.f32.mxu0 %v497_v45  ;;  %v470_v59 = vmul.f32 %v454_v48, %v438_v52 }
  0xcb   : > { %v1091_v55 = vpop.eup %1090 }
  0xcc   : > { %v499_v58 = vadd.f32 %v1530_v49, %v471_v54  ;;  %v441_v62 = vmul.f32 %v1091_v55, %v1512_v25  ;;  %v440_v57 = vmul.f32 %v1091_v55, %v1520_v35  ;;  %v498_v12 = vadd.f32 %v1525_v42, %v470_v59  ;;  %v726_v54 = vld [vmem:[%s1835_s5 + $0xd0] sm:$0xff]  ;;  %v725_v55 = vld [vmem:[%s1835_s5 + $0xc8] sm:$0xff] }
  0xcd   : > { %622 = vmatmul.mubr.f32.gmra.mxu0 %v496_v56  ;;  %v724_v56 = vld [vmem:[%s1835_s5 + $0xc0] sm:$0xff]  ;;  %v722_v59 = vld [vmem:[%s1835_s5 + $0xb0] sm:$0xff] }
  0xce   : > { %626 = vmatprep.mubr.f32.mxu0 %v499_v58  ;;  %v473_v5 = vmul.f32 %v457_v61, %v441_v62  ;;  %v472_v7 = vmul.f32 %v456_v60, %v440_v57  ;;  %v723_v58 = vld [vmem:[%s1835_s5 + $0xb8] sm:$0xff]  ;;  %v721_v60 = vld [vmem:[%s1835_s5 + $0xa8] sm:$0xff]  ;;  %v720_v61 = vld [vmem:[%s1835_s5 + $0xa0] sm:$0xff] }
  0xcf   : > { %v1093_v63 = vpop.eup %1092  ;;  %v719_v62 = vld [vmem:[%s1835_s5 + $0x98] sm:$0xff]  ;;  %v718_v57 = vld [vmem:[%s1835_s5 + $0x90] sm:$0xff] }
  0xd0   : > { %v443_v31 = vmul.f32 %v1093_v63, %v1512_v25  ;;  %v442_v13 = vmul.f32 %v1093_v63, %v1520_v35  ;;  %v501_v6 = vadd.f32 %v1530_v49, %v473_v5  ;;  %v500_v27 = vadd.f32 %v1525_v42, %v472_v7  ;;  %v717_v63 = vld [vmem:[%s1835_s5 + $0x88] sm:$0xff]  ;;  %v716_v5 = vld [vmem:[%s1835_s5 + $0x80] sm:$0xff]  ;;  %v715_v7 = vld [vmem:[%s1835_s5 + $0x78] sm:$0xff] }
  0xd1   : > { %627 = vmatmul.mubr.f32.gmra.mxu0 %v498_v12  ;;  %v713_v12 = vld [vmem:[%s1835_s5 + $0x68] sm:$0xff] }
  0xd2   : > { %v475_v15 = vmul.f32 %v459_v11, %v443_v31  ;;  %631 = vmatprep.mubr.f32.mxu0 %v501_v6  ;;  %v474_v26 = vmul.f32 %v458_v14, %v442_v13  ;;  %v714_v11 = vld [vmem:[%s1835_s5 + $0x70] sm:$0xff]  ;;  %v712_v31 = vld [vmem:[%s1835_s5 + $0x60] sm:$0xff]  ;;  %v711_v13 = vld [vmem:[%s1835_s5 + $0x58] sm:$0xff] }
  0xd3   : > { %v1095_v19 = vpop.eup %1094  ;;  %v710_v6 = vld [vmem:[%s1835_s5 + $0x50] sm:$0xff]  ;;  %v709_v14 = vld [vmem:[%s1835_s5 + $0x48] sm:$0xff] }
  0xd4   : > { %v503_v24 = vadd.f32 %v1530_v49, %v475_v15  ;;  %v445_v30 = vmul.f32 %v1095_v19, %v1512_v25  ;;  %v444_v32 = vmul.f32 %v1095_v19, %v1520_v35  ;;  %v502_v38 = vadd.f32 %v1525_v42, %v474_v26  ;;  %v708_v15 = vld [vmem:[%s1835_s5 + $0x40] sm:$0xff]  ;;  %v707_v19 = vld [vmem:[%s1835_s5 + $0x38] sm:$0xff] }
  0xd5   : > { %632 = vmatmul.mubr.f32.gmra.mxu0 %v500_v27  ;;  %v705_v27 = vld [vmem:[%s1835_s5 + $0x28] sm:$0xff]  ;;  %v703_v26 = vld [vmem:[%s1835_s5 + $0x18] sm:$0xff] }
  0xd6   : > { %v477_v20 = vmul.f32 %v461_v21, %v445_v30  ;;  %636 = vmatprep.mubr.f32.mxu0 %v503_v24  ;;  %v476_v41 = vmul.f32 %v460_v33, %v444_v32  ;;  %v706_v21 = vld [vmem:[%s1835_s5 + $0x30] sm:$0xff]  ;;  %v704_v24 = vld [vmem:[%s1835_s5 + $0x20] sm:$0xff]  ;;  %v701_v32 = vld [vmem:[%s1835_s5 + $0x8] sm:$0xff] }
  0xd7   : > { %v1097_v34 = vpop.eup %1096  ;;  %v702_v30 = vld [vmem:[%s1835_s5 + $0x10] sm:$0xff]  ;;  %v700_v33 = vld [vmem:[%s1835_s5] sm:$0xff] }
  0xd8   : > { %v505_v39 = vadd.f32 %v1530_v49, %v477_v20  ;;  %v447_v44 = vmul.f32 %v1097_v34, %v1512_v25  ;;  %v446_v45 = vmul.f32 %v1097_v34, %v1520_v35  ;;  %v504_v51 = vadd.f32 %v1525_v42, %v476_v41  ;;  %v731_v25 = vld [vmem:[%s1835_s5 + $0xf8] sm:$0xff]  ;;  %v730_v35 = vld [vmem:[%s1835_s5 + $0xf0] sm:$0xff] }
  0xd9   : > { %637 = vmatmul.mubr.f32.gmra.mxu0 %v502_v38  ;;  %744 = vmatprep.subr.mxu1 %v731_v25  ;;  %v1192_v20 = vmov 0.0   ;;  %v974_v38 = vld [vmem:[%s1834_s4] ss:$0 sm:$0xff] }
  0xda   : > { %641 = vmatprep.mubr.f32.mxu0 %v505_v39  ;;  %v479_v40 = vmul.f32 %v463_v43, %v447_v44  ;;  %v478_v52 = vmul.f32 %v462_v50, %v446_v45  ;;  %745 = vmatpush1.msra.mxu1 %v730_v35 }
  0xdb   : > { %746 = vmatprep.subr.mxu1 %v729_v3  ;;  %808 = vmatprep.mubr.f32.mxu1 %v1192_v20 }
  0xdc   : > { %v507_v53 = vadd.f32 %v1530_v49, %v479_v40  ;;  %v506_v48 = vadd.f32 %v1525_v42, %v478_v52  ;;  %v728_v42 = vld [vmem:[%s1835_s5 + $0xe0] sm:$0xff]  ;;  %v727_v49 = vld [vmem:[%s1835_s5 + $0xd8] sm:$0xff] }
  0xdd   : > { %642 = vmatmul.mubr.f32.gmra.mxu0 %v504_v51  ;;  %747 = vmatpush1.msra.mxu1 %v728_v42 }
  0xde   : > { %646 = vmatprep.mubr.f32.mxu0 %v507_v53  ;;  %748 = vmatprep.subr.mxu1 %v727_v49 }
  0xdf   : > { %749 = vmatpush1.msra.mxu1 %v726_v54 }
  0xe0   : > { %750 = vmatprep.subr.mxu1 %v725_v55 }
  0xe1   : > { %647 = vmatmul.mubr.f32.gmra.mxu0 %v506_v48  ;;  %751 = vmatpush1.msra.mxu1 %v724_v56 }
  0xe2   : > { %752 = vmatprep.subr.mxu1 %v723_v58 }
  0xe3   : > { %753 = vmatpush1.msra.mxu1 %v722_v59 }
  0xe4   : > { %754 = vmatprep.subr.mxu1 %v721_v60 }
  0xe5   : > { %755 = vmatpush1.msra.mxu1 %v720_v61 }
  0xe6   : > { %756 = vmatprep.subr.mxu1 %v719_v62 }
  0xe7   : > { %757 = vmatpush1.msra.mxu1 %v718_v57 }
  0xe8   : > { %758 = vmatprep.subr.mxu1 %v717_v63 }
  0xe9   : > { %759 = vmatpush1.msra.mxu1 %v716_v5 }
  0xea   : > { %760 = vmatprep.subr.mxu1 %v715_v7 }
  0xeb   : > { %761 = vmatpush1.msra.mxu1 %v714_v11 }
  0xec   : > { %762 = vmatprep.subr.mxu1 %v713_v12 }
  0xed   : > { %763 = vmatpush1.msra.mxu1 %v712_v31 }
  0xee   : > { %764 = vmatprep.subr.mxu1 %v711_v13 }
  0xef   : > { %765 = vmatpush1.msra.mxu1 %v710_v6 }
  0xf0   : > { %766 = vmatprep.subr.mxu1 %v709_v14 }
  0xf1   : > { %767 = vmatpush1.msra.mxu1 %v708_v15 }
  0xf2   : > { %768 = vmatprep.subr.mxu1 %v707_v19 }
  0xf3   : > { %769 = vmatpush1.msra.mxu1 %v706_v21 }
  0xf4   : > { %770 = vmatprep.subr.mxu1 %v705_v27 }
  0xf5   : > { %771 = vmatpush1.msra.mxu1 %v704_v24 }
  0xf6   : > { %772 = vmatprep.subr.mxu1 %v703_v26 }
  0xf7   : > { %773 = vmatpush1.msra.mxu1 %v702_v30 }
  0xf8   : > { %774 = vmatprep.subr.mxu1 %v701_v32 }
  0xf9   : > { %775 = vmatpush1.msra.mxu1 %v700_v33 }
 0x185   : > { %v1016_v34 = vpop.f32.mrf.mxu0 }
 0x187   : > { %v1017_v39 = vpop.f32.mrf.mxu0 }
 0x188   : > { %v1018_v41 = vadd.f32 %v1017_v39, %v1016_v34 }
 0x189   : > { %v1019_v43 = vpop.f32.mrf.mxu0 }
 0x18a   : > { %v1700_v44 = vadd.f32 %v1018_v41, %v974_v38 }
 0x18b   : > { %v1020_v45 = vpop.f32.mrf.mxu0 }
 0x18c   : > { %v652_v50 = vmul.f32 -1.702, %v1700_v44  ;;  %v1021_v40 = vadd.f32 %v1020_v45, %v1019_v43 }
 0x18d   : > { %v1022_v51 = vpop.f32.mrf.mxu0 }
 0x18e   : > { %v660_v52 = vmul.f32 1.442695, %v652_v50  ;;  %v1703_v53 = vadd.f32 %v1021_v40, %v974_v38 }
 0x18f   : > { %v1023_v48 = vpop.f32.mrf.mxu0 }
 0x190   : > { %1098 = vpow2.f32 %v660_v52  ;;  %v653_v25 = vmul.f32 -1.702, %v1703_v53  ;;  %v1024_v35 = vadd.f32 %v1023_v48, %v1022_v51 }
 0x191   : > { %v1025_v3 = vpop.f32.mrf.mxu0 }
 0x192   : > { %v662_v42 = vmul.f32 1.442695, %v653_v25  ;;  %v1706_v49 = vadd.f32 %v1024_v35, %v974_v38 }
 0x193   : > { %v1026_v54 = vpop.f32.mrf.mxu0 }
 0x194   : > { %1100 = vpow2.f32 %v662_v42  ;;  %v654_v55 = vmul.f32 -1.702, %v1706_v49  ;;  %v1027_v56 = vadd.f32 %v1026_v54, %v1025_v3 }
 0x195   : > { %v1028_v58 = vpop.f32.mrf.mxu0 }
 0x196   : > { %v664_v59 = vmul.f32 1.442695, %v654_v55  ;;  %v1709_v60 = vadd.f32 %v1027_v56, %v974_v38 }
 0x197   : > { %v1029_v61 = vpop.f32.mrf.mxu0 }
 0x198   : > { %1102 = vpow2.f32 %v664_v59  ;;  %v655_v62 = vmul.f32 -1.702, %v1709_v60  ;;  %v1030_v57 = vadd.f32 %v1029_v61, %v1028_v58 }
 0x199   : > { %v1031_v63 = vpop.f32.mrf.mxu0 }
 0x19a   : > { %v666_v5 = vmul.f32 1.442695, %v655_v62  ;;  %v1712_v7 = vadd.f32 %v1030_v57, %v974_v38 }
 0x19b   : > { %v1032_v11 = vpop.f32.mrf.mxu0 }
 0x19c   : > { %1104 = vpow2.f32 %v666_v5  ;;  %v656_v12 = vmul.f32 -1.702, %v1712_v7  ;;  %v1033_v31 = vadd.f32 %v1032_v11, %v1031_v63 }
 0x19d   : > { %v1099_v13 = vpop.eup %1098  ;;  %v1034_v6 = vpop.f32.mrf.mxu0 }
 0x19e   : > { %v676_v14 = vadd.f32 1.0, %v1099_v13  ;;  %v668_v15 = vmul.f32 1.442695, %v656_v12  ;;  %v639_v19 = vadd.f32 %v1033_v31, %v974_v38 }
 0x19f   : > { %v1035_v21 = vpop.f32.mrf.mxu0 }
 0x1a0   : > { %1106 = vrcp.f32 %v676_v14  ;;  %v657_v27 = vmul.f32 -1.702, %v639_v19  ;;  %v1036_v24 = vadd.f32 %v1035_v21, %v1034_v6 }
 0x1a1   : > { %v1101_v26 = vpop.eup %1100  ;;  %1108 = vpow2.f32 %v668_v15  ;;  %v1037_v30 = vpop.f32.mrf.mxu0 }
 0x1a2   : > { %v677_v32 = vadd.f32 1.0, %v1101_v26  ;;  %v670_v33 = vmul.f32 1.442695, %v657_v27  ;;  %v644_v34 = vadd.f32 %v1036_v24, %v974_v38 }
 0x1a3   : > { %v1038_v39 = vpop.f32.mrf.mxu0 }
 0x1a4   : > { %1110 = vrcp.f32 %v677_v32  ;;  %v658_v41 = vmul.f32 -1.702, %v644_v34  ;;  %v1039_v43 = vadd.f32 %v1038_v39, %v1037_v30 }
 0x1a5   : > { %v1103_v45 = vpop.eup %1102  ;;  %1112 = vpow2.f32 %v670_v33 }
 0x1a6   : > { %v678_v50 = vadd.f32 1.0, %v1103_v45  ;;  %v672_v40 = vmul.f32 1.442695, %v658_v41  ;;  %v649_v51 = vadd.f32 %v1039_v43, %v974_v38 }
 0x1a8   : > { %1114 = vrcp.f32 %v678_v50  ;;  %v659_v52 = vmul.f32 -1.702, %v649_v51 }
 0x1a9   : > { %v1105_v48 = vpop.eup %1104  ;;  %1116 = vpow2.f32 %v672_v40 }
 0x1aa   : > { %v679_v25 = vadd.f32 1.0, %v1105_v48  ;;  %v674_v35 = vmul.f32 1.442695, %v659_v52 }
 0x1ac   : > { %1118 = vrcp.f32 %v679_v25 }
 0x1ad   : > { %v1107_v3 = vpop.eup %1106  ;;  %1120 = vpow2.f32 %v674_v35 }
 0x1ae   : > { %v1109_v42 = vpop.eup %1108  ;;  %v685_v54 = vmul.f32 %v1107_v3, %v1700_v44 }
 0x1af   : > { %v680_v55 = vadd.f32 1.0, %v1109_v42 }
 0x1b0   : > { %809 = vmatmul.mubr.f32.vlgmr.msra.gmra.mxu1 %v685_v54 }
 0x1b1   : > { %v1111_v56 = vpop.eup %1110  ;;  %1122 = vrcp.f32 %v680_v55  ;;  %814 = vmatprep.mubr.f32.mxu1 %v1192_v20 }
 0x1b2   : > { %v1113_v58 = vpop.eup %1112  ;;  %v687_v38 = vmul.f32 %v1111_v56, %v1703_v53 }
 0x1b3   : > { %v681_v59 = vadd.f32 1.0, %v1113_v58 }
 0x1b4   : > { %815 = vmatmul.mubr.f32.gmra.mxu1 %v687_v38 }
 0x1b5   : > { %v1115_v61 = vpop.eup %1114  ;;  %1124 = vrcp.f32 %v681_v59  ;;  %820 = vmatprep.mubr.f32.mxu1 %v1192_v20 }
 0x1b6   : > { %v1117_v62 = vpop.eup %1116  ;;  %v689_v57 = vmul.f32 %v1115_v61, %v1706_v49 }
 0x1b7   : > { %v682_v63 = vadd.f32 1.0, %v1117_v62 }
 0x1b8   : > { %821 = vmatmul.mubr.f32.gmra.mxu1 %v689_v57 }
 0x1b9   : > { %v1119_v44 = vpop.eup %1118  ;;  %1126 = vrcp.f32 %v682_v63  ;;  %826 = vmatprep.mubr.f32.mxu1 %v1192_v20 }
 0x1ba   : > { %v1121_v5 = vpop.eup %1120  ;;  %v691_v11 = vmul.f32 %v1119_v44, %v1709_v60 }
 0x1bb   : > { %v683_v12 = vadd.f32 1.0, %v1121_v5 }
 0x1bc   : > { %827 = vmatmul.mubr.f32.gmra.mxu1 %v691_v11 }
 0x1bd   : > { %1128 = vrcp.f32 %v683_v12  ;;  %832 = vmatprep.mubr.f32.mxu1 %v1192_v20 }
 0x1be   : > { %v1123_v53 = vpop.eup %1122 }
 0x1bf   : > { %v693_v31 = vmul.f32 %v1123_v53, %v1712_v7  ;;  %v732_v7 = vld [vmem:[%s1836_s6] sm:$0x3] }
 0x1c0   : > { %v737_v21 = vrot.slane %v732_v7, %v1507_v18 }
 0x1c1   : > { %833 = vmatmul.mubr.f32.gmra.mxu1 %v693_v31 }
 0x1c2   : > { %v1125_v49 = vpop.eup %1124  ;;  %838 = vmatprep.mubr.f32.mxu1 %v1192_v20 }
 0x1c3   : > { %v695_v13 = vmul.f32 %v1125_v49, %v639_v19  ;;  %v1735_v19 = vrot.slane %v732_v7, %v1500_v10 }
 0x1c5   : > { %839 = vmatmul.mubr.f32.gmra.mxu1 %v695_v13 }
 0x1c6   : > { %v1127_v6 = vpop.eup %1126  ;;  %844 = vmatprep.mubr.f32.mxu1 %v1192_v20 }
 0x1c7   : > { %v697_v60 = vmul.f32 %v1127_v6, %v644_v34 }
 0x1c9   : > { %845 = vmatmul.mubr.f32.gmra.mxu1 %v697_v60 }
 0x1ca   : > { %v1129_v14 = vpop.eup %1128  ;;  %850 = vmatprep.mubr.f32.mxu1 %v1192_v20 }
 0x1cb   : > { %v699_v15 = vmul.f32 %v1129_v14, %v649_v51 }
 0x1cd   : > { %851 = vmatmul.mubr.f32.gmra.mxu1 %v699_v15 }
 0x270   : > { %v810_v27 = vpop.f32.mrf.mxu1 }
 0x271   : > { %v811_v24 = vadd.f32 %v810_v27, %v737_v21 }
 0x272   : > { %v812_v26 = vpop.f32.mrf.mxu1 }
 0x273   : > { %v857_v30 = vadd.f32 %v811_v24, %v1297_v2  ;;  %v813_v20 = vadd.f32 %v812_v26, %v1735_v19 }
 0x274   : > { %v816_v32 = vpop.f32.mrf.mxu1 }
 0x275   : > { %873 = vst [vmem:[%s1739_s16] sm:$0xff] %v857_v30  ;;  %v858_v18 = vadd.f32 %v813_v20, %v1302_v4  ;;  %v817_v10 = vadd.f32 %v816_v32, %v737_v21 }
 0x276   : > { %v818_v33 = vpop.f32.mrf.mxu1 }
 0x277   : > { %874 = vst [vmem:[%s1739_s16 + $0x8] sm:$0xff] %v858_v18  ;;  %v859_v34 = vadd.f32 %v817_v10, %v1291_v0  ;;  %v819_v2 = vadd.f32 %v818_v33, %v1735_v19 }
 0x278   : > { %v822_v39 = vpop.f32.mrf.mxu1 }
 0x279   : > { %875 = vst [vmem:[%s1739_s16 + $0x10] sm:$0xff] %v859_v34  ;;  %v860_v41 = vadd.f32 %v819_v2, %v1294_v1  ;;  %v823_v43 = vadd.f32 %v822_v39, %v737_v21 }
 0x27a   : > { %v824_v45 = vpop.f32.mrf.mxu1 }
 0x27b   : > { %876 = vst [vmem:[%s1739_s16 + $0x18] sm:$0xff] %v860_v41  ;;  %v861_v50 = vadd.f32 %v823_v43, %v1311_v8  ;;  %v825_v4 = vadd.f32 %v824_v45, %v1735_v19 }
 0x27c   : > { %v828_v40 = vpop.f32.mrf.mxu1 }
 0x27d   : > { %877 = vst [vmem:[%s1739_s16 + $0x20] sm:$0xff] %v861_v50  ;;  %v862_v0 = vadd.f32 %v825_v4, %v1314_v9  ;;  %v829_v51 = vadd.f32 %v828_v40, %v737_v21 }
 0x27e   : > { %v830_v52 = vpop.f32.mrf.mxu1 }
 0x27f   : > { %878 = vst [vmem:[%s1739_s16 + $0x28] sm:$0xff] %v862_v0  ;;  %v863_v48 = vadd.f32 %v829_v51, %v1325_v16  ;;  %v831_v1 = vadd.f32 %v830_v52, %v1735_v19 }
 0x281   : > { %879 = vst [vmem:[%s1739_s16 + $0x30] sm:$0xff] %v863_v48  ;;  %v864_v25 = vadd.f32 %v831_v1, %v1328_v17  ;;  %v834_v8 = vpop.f32.mrf.mxu1 }
 0x282   : > { %v835_v35 = vadd.f32 %v834_v8, %v737_v21 }
 0x283   : > { %880 = vst [vmem:[%s1739_s16 + $0x38] sm:$0xff] %v864_v25  ;;  %v836_v3 = vpop.f32.mrf.mxu1 }
 0x284   : > { %v865_v42 = vadd.f32 %v835_v35, %v1337_v22  ;;  %v837_v9 = vadd.f32 %v836_v3, %v1735_v19 }
 0x285   : > { %v840_v54 = vpop.f32.mrf.mxu1 }
 0x286   : > { %881 = vst [vmem:[%s1739_s16 + $0x40] sm:$0xff] %v865_v42  ;;  %v866_v16 = vadd.f32 %v837_v9, %v1340_v23  ;;  %v841_v55 = vadd.f32 %v840_v54, %v737_v21 }
 0x287   : > { %v842_v56 = vpop.f32.mrf.mxu1 }
 0x288   : > { %882 = vst [vmem:[%s1739_s16 + $0x48] sm:$0xff] %v866_v16  ;;  %v867_v17 = vadd.f32 %v841_v55, %v1349_v28  ;;  %v843_v58 = vadd.f32 %v842_v56, %v1735_v19 }
 0x289   : > { %v846_v38 = vpop.f32.mrf.mxu1 }
 0x28a   : > { %883 = vst [vmem:[%s1739_s16 + $0x50] sm:$0xff] %v867_v17  ;;  %v868_v22 = vadd.f32 %v843_v58, %v1352_v29  ;;  %v847_v59 = vadd.f32 %v846_v38, %v737_v21 }
 0x28b   : > { %v848_v61 = vpop.f32.mrf.mxu1 }
 0x28c   : > { %884 = vst [vmem:[%s1739_s16 + $0x58] sm:$0xff] %v868_v22  ;;  %v869_v23 = vadd.f32 %v847_v59, %v1367_v36  ;;  %v849_v62 = vadd.f32 %v848_v61, %v1735_v19 }
 0x28d   : > { %v852_v57 = vpop.f32.mrf.mxu1 }
 0x28e   : > { %885 = vst [vmem:[%s1739_s16 + $0x60] sm:$0xff] %v869_v23  ;;  %v870_v28 = vadd.f32 %v849_v62, %v1370_v37  ;;  %v853_v63 = vadd.f32 %v852_v57, %v737_v21 }
 0x28f   : > { %v854_v44 = vpop.f32.mrf.mxu1 }
 0x290   : > { %886 = vst [vmem:[%s1739_s16 + $0x68] sm:$0xff] %v870_v28  ;;  %v871_v29 = vadd.f32 %v853_v63, %v1391_v46  ;;  %v855_v5 = vadd.f32 %v854_v44, %v1735_v19 }
 0x292   : > { %887 = vst [vmem:[%s1739_s16 + $0x70] sm:$0xff] %v871_v29  ;;  %v872_v36 = vadd.f32 %v855_v5, %v1394_v47 }
 0x294   : > { %888 = vst [vmem:[%s1739_s16 + $0x78] sm:$0xff] %v872_v36 }
 0x295   : > { %1143 = shalt.err (!%p1140_p3)
}
 0x296   : > { %s1144_s9 = scalar_lea.hbm %s1781_s22, 2048  ;;  %s1148_s15 = scalar_lea.hbm %s1837_s7, 4096 }
 0x297   : > { %p1145_p4 = scmp.ne.s32.totalorder %s1781_s22, %s1144_s9  ;;  %p1149_p9 = scmp.lt.s32.totalorder %s1781_s22, %s1837_s7 }
 0x298   : > { %p1150_p10 = scmp.lt.s32.totalorder %s1148_s15, %s1144_s9 }
 0x299   : > { %p1146_p7 = pnand %p1145_p4, %p1274_p5 }
 0x29a   : > { %p1151_p11 = por %p1150_p10, %p1149_p9 }
 0x29b   : > { %p1147_p8 = pneg %p1146_p7 }
 0x29d   : > { %p1152_p12 = pnand %p1151_p11, %p1147_p8 }
 0x29f   : > { %1155 = shalt.err (!%p1152_p12)
}
 0x2a0   : > { %s1194_s20 = smov 256   ;;  %s1195_s21 = smov 16  }
 0x2a1   : > { %1040 = dma.vmem_to_hbm [thread:$0]  (%p1274_p5), %s1783_s19, 2048, %s1781_s22, %s1790_s28, %s1194_s20, %s1194_s20, %s1195_s21  }
 0x2a2 PF: > { %p1046_p13 = scmp.ge.s32.totalorder %s1190_s27, 2  ;;  %s919_s17 = sand.u32 1, %s1178_s24  }
 0x2a3   : > { %s920_s23 = scalar_lea.sflag [#allocation3], %s919_s17 }
 0x2a4   : > { %p1043_p0 = pnand %p1046_p13, %p1278_p6 }
 0x2a6   : > { %p1044_p1 = pneg %p1043_p0 }
 0x2a8   : > { %1173 = dma.done.wait (%p1044_p1), %s920_s23, 2048  }
 0x2a9   : > { %1175 = vsyncadd (%p1044_p1), %s920_s23, 4294965248  ;;  %p17_p2 = scmp.ge.s32.totalorder %s1261_s30, 4   ;;  %s1840_s24 = smov %s1182_s25 }
 0x2aa   : > { %s1841_s25 = smov %s1186_s26  ;;  %s1842_s26 = smov %s1272_s10 }
 0x2ab   : > { %s1843_s27 = smov %s1261_s30  ;;  %19 = sbr.rel (!%p17_p2) target bundleno = 3 (0x3), region = 83 }
 0x2b0   :  { %925 = vsyncpa [#allocation3], 1 }
 0x2b1   :  { %927 = vsyncpa [#allocation3 + $0x1], 1 }

</bundles_post_ra>
